<compile_context>
chip_gen: v7x
topology: tpu7x:2x2x1
jax: 0.10.0
libtpu: 0.0.40
codegen_flags: <defaults>
</compile_context>

<pallas_src>
import math
import functools

import jax
import jax.numpy as jnp
from jax.experimental import pallas as pl
from jax.experimental.pallas import tpu as pltpu


# ===========================================================================
# Plan-build helpers (run once per (H, W), outside the kernels).
# Folded layout:  NHWC (N, H, W, C)  ->  (N, H, W*C)
# ===========================================================================
def _band_from_weights(w, W_in, W_out):
    """Band matrices for a zero-padded ('same') conv along the width axis in
    width-folded layout.  w: (K, K, Cin, Cout) -> (K, W_in*Cin, W_out*Cout)."""
    K, _, Cin, Cout = w.shape
    pad = K // 2
    xi = jnp.arange(W_in)[:, None]              # input column
    xo = jnp.arange(W_out)[None, :]             # output column
    kx = xi - xo + pad                          # (W_in, W_out) width tap index
    valid = (kx >= 0) & (kx < K)
    wt = w[:, jnp.clip(kx, 0, K - 1)]           # (K, W_in, W_out, Cin, Cout)
    wt = jnp.where(valid[None, :, :, None, None], wt, 0.0)
    return jnp.transpose(wt, (0, 1, 3, 2, 4)).reshape(K, W_in * Cin, W_out * Cout)


def _band_from_weights_upsampled(w, W_low, W_out, f):
    """Band matrices for a conv applied to a nearest width-upsampled (factor f)
    input, reading directly from the low-res folded input.
    w: (K, K, Cin, Cout) -> (K, W_low*Cin, W_out*Cout)."""
    K, _, Cin, Cout = w.shape
    pad = K // 2
    W_up = W_low * f
    kx = jnp.arange(K)[:, None]                 # (K, 1)
    xo = jnp.arange(W_out)[None, :]             # (1, W_out)
    xu = xo + kx - pad                          # column in the (virtual) upsampled image
    valid = (xu >= 0) & (xu < W_up)
    xl = jnp.clip(xu // f, 0, W_low - 1)        # low-res source column
    onehot = ((jnp.arange(W_low)[None, None, :] == xl[:, :, None])
              & valid[:, :, None])              # (K, W_out, W_low)
    B = jnp.einsum('axl,yaio->ylixo', onehot.astype(w.dtype), w)
    return B.reshape(K, W_low * Cin, W_out * Cout)


def _row_upsample_pad_matrix(H_out, H_low, f, pad):
    """(H_out + 2*pad, H_low) 0/1 matrix: nearest row-upsample by f plus zero
    row padding, applied as a single matmul  R @ low."""
    rows = jnp.arange(H_out + 2 * pad)
    src = jnp.clip((rows - pad) // f, 0, H_low - 1)
    valid = (rows >= pad) & (rows < pad + H_out)
    R = (jnp.arange(H_low)[None, :] == src[:, None]) & valid[:, None]
    return R.astype(jnp.float32)


def _pool_select_matrices(W, C, f):
    """(f, W*C, Wo*C) 0/1 matrices: S[dx] picks columns (f*xo+dx)*C+c -> xo*C+c,
    so width max-pooling is  max_dx (row_maxed @ S[dx])  (lane-dense output)."""
    Wo = W // f
    S = jnp.zeros((f, W * C, Wo * C), jnp.float32)
    xo = jnp.arange(Wo)[:, None]
    c = jnp.arange(C)[None, :]
    cols = (xo * C + c).reshape(-1)
    for dx in range(f):
        rows = ((f * xo + dx) * C + c).reshape(-1)
        S = S.at[dx, rows, cols].set(1.0)
    return S


def _fold_bias(b, W):
    """(C,) -> (1, W*C) bias tiled across the folded width axis."""
    return jnp.tile(b, W).reshape(1, -1)


def _const_spec(shape):
    nd = len(shape)
    return pl.BlockSpec(shape, lambda n, _nd=nd: (0,) * _nd)


# ===========================================================================
# Fused Pallas kernels (one grid step per image; grid=(N,))
# ===========================================================================
def _encoder_kernel(*refs, K, H, f, pool, compute_dtype):
    """Fused encoder block: conv1+ReLU -> conv2+ReLU -> optional fxf max-pool.
    Width-folded lane-dense layout; intermediates stay in VMEM scratch."""
    if pool:
        (x_ref, B1_ref, b1_ref, B2_ref, b2_ref, S_ref,
         skip_ref, pool_ref, pin_ref, pmid_ref) = refs
    else:
        (x_ref, B1_ref, b1_ref, B2_ref, b2_ref,
         out_ref, pin_ref, pmid_ref) = refs
    pad = K // 2
    cd = compute_dtype

    # zero-padded (rows) input, built in VMEM (no jnp.pad / HBM round trip)
    pin_ref[...] = jnp.zeros_like(pin_ref)
    pin_ref[pad:pad + H, :] = x_ref[...]

    # conv1 + ReLU: K banded matmuls, contraction = W*Cin, output lanes = W*Cmid
    acc = jnp.zeros((H, B1_ref.shape[2]), jnp.float32)
    for ky in range(K):
        acc = acc + jnp.dot(pin_ref[ky:ky + H, :].astype(cd), B1_ref[ky],
                            preferred_element_type=jnp.float32)
    pmid_ref[...] = jnp.zeros_like(pmid_ref)
    pmid_ref[pad:pad + H, :] = jnp.maximum(acc + b1_ref[...], 0.0)

    # conv2 + ReLU
    acc = jnp.zeros((H, B2_ref.shape[2]), jnp.float32)
    for ky in range(K):
        acc = acc + jnp.dot(pmid_ref[ky:ky + H, :].astype(cd), B2_ref[ky],
                            preferred_element_type=jnp.float32)
    a2 = jnp.maximum(acc + b2_ref[...], 0.0)

    if not pool:
        out_ref[...] = a2
        return

    skip_ref[...] = a2                          # full-res skip connection output
    # fused f x f max-pool on the VMEM-resident activation:
    #   rows  : sublane-strided loads + elementwise max
    #   width : exact 0/1 column-selection matmuls (lane-dense pooled store)
    Ho = H // f
    m = skip_ref[pl.ds(0, Ho, stride=f), :]
    for dy in range(1, f):
        m = jnp.maximum(m, skip_ref[pl.ds(dy, Ho, stride=f), :])
    p = jnp.dot(m, S_ref[0], preferred_element_type=jnp.float32)
    for dx in range(1, f):
        p = jnp.maximum(p, jnp.dot(m, S_ref[dx],
                                   preferred_element_type=jnp.float32))
    pool_ref[...] = p


def _decoder_kernel(*refs, K, H, final, final_act, compute_dtype):
    """Fused decoder block: nearest upsample + (identity crop) + channel concat
    + conv1+ReLU -> conv2+ReLU (+ optional fused final 1x1 conv + activation).
    The concat is never materialised: conv1 is split into a skip-branch and an
    upsample-branch banded matmul."""
    if final:
        (skip_ref, low_ref, R_ref, B1s_ref, B1u_ref, b1_ref, B2_ref, b2_ref,
         Bf_ref, bf_ref, out_ref, ps_ref, pu_ref, pm_ref) = refs
    else:
        (skip_ref, low_ref, R_ref, B1s_ref, B1u_ref, b1_ref, B2_ref, b2_ref,
         out_ref, ps_ref, pu_ref, pm_ref) = refs
    pad = K // 2
    cd = compute_dtype

    # row-padded skip activation in VMEM scratch
    ps_ref[...] = jnp.zeros_like(ps_ref)
    ps_ref[pad:pad + H, :] = skip_ref[...]
    # nearest row-upsample + zero row-padding of the low-res input: one 0/1 matmul
    pu_ref[...] = jnp.dot(R_ref[...], low_ref[...],
                          preferred_element_type=jnp.float32)

    # conv1 + ReLU over the (virtual) concat [skip, upsampled]
    acc = jnp.zeros((H, B1s_ref.shape[2]), jnp.float32)
    for ky in range(K):
        acc = acc + jnp.dot(ps_ref[ky:ky + H, :].astype(cd), B1s_ref[ky],
                            preferred_element_type=jnp.float32)
        acc = acc + jnp.dot(pu_ref[ky:ky + H, :].astype(cd), B1u_ref[ky],
                            preferred_element_type=jnp.float32)
    pm_ref[...] = jnp.zeros_like(pm_ref)
    pm_ref[pad:pad + H, :] = jnp.maximum(acc + b1_ref[...], 0.0)

    # conv2 + ReLU
    acc = jnp.zeros((H, B2_ref.shape[2]), jnp.float32)
    for ky in range(K):
        acc = acc + jnp.dot(pm_ref[ky:ky + H, :].astype(cd), B2_ref[ky],
                            preferred_element_type=jnp.float32)
    a2 = jnp.maximum(acc + b2_ref[...], 0.0)

    if final:
        o = jnp.dot(a2.astype(cd), Bf_ref[...],
                    preferred_element_type=jnp.float32) + bf_ref[...]
        if final_act is not None:
            o = final_act(o)
        out_ref[...] = o
    else:
        out_ref[...] = a2


# ===========================================================================
# pallas_call wrappers
# ===========================================================================
def encoder_block(x, p, *, K, f, bf16):
    N, H, WCin = x.shape
    W, Cout, pool = p["W"], p["Cout"], p["pool"]
    pad = K // 2
    Hp = H + 2 * pad
    cd = jnp.bfloat16 if bf16 else jnp.float32
    kernel = functools.partial(_encoder_kernel, K=K, H=H, f=f, pool=pool,
                               compute_dtype=cd)
    in_specs = [
        pl.BlockSpec((None, H, WCin), lambda n: (n, 0, 0)),
        _const_spec(p["B1"].shape),
        _const_spec(p["b1"].shape),
        _const_spec(p["B2"].shape),
        _const_spec(p["b2"].shape),
    ]
    args = [x, p["B1"], p["b1"], p["B2"], p["b2"]]
    scratch = [pltpu.VMEM((Hp, WCin), jnp.float32),
               pltpu.VMEM((Hp, W * Cout), jnp.float32)]
    if pool:
        Ho, Wo = H // f, W // f
        in_specs.append(_const_spec(p["S"].shape))
        args.append(p["S"])
        out_shape = (jax.ShapeDtypeStruct((N, H, W * Cout), jnp.float32),
                     jax.ShapeDtypeStruct((N, Ho, Wo * Cout), jnp.float32))
        out_specs = (pl.BlockSpec((None, H, W * Cout), lambda n: (n, 0, 0)),
                     pl.BlockSpec((None, Ho, Wo * Cout), lambda n: (n, 0, 0)))
    else:
        out_shape = jax.ShapeDtypeStruct((N, H, W * Cout), jnp.float32)
        out_specs = pl.BlockSpec((None, H, W * Cout), lambda n: (n, 0, 0))
    return pl.pallas_call(
        kernel, out_shape=out_shape, grid=(N,),
        in_specs=in_specs, out_specs=out_specs, scratch_shapes=scratch,
        compiler_params=pltpu.CompilerParams(dimension_semantics=("parallel",)),
    )(*args)


def decoder_block(skip, low, p, *, K, bf16, final_act):
    N, H, WC1 = skip.shape
    _, Hl, WlC2 = low.shape
    W, Cout, final = p["W"], p["Cout"], p["final"]
    pad = K // 2
    Hp = H + 2 * pad
    cd = jnp.bfloat16 if bf16 else jnp.float32
    kernel = functools.partial(_decoder_kernel, K=K, H=H, final=final,
                               final_act=(final_act if final else None),
                               compute_dtype=cd)
    in_specs = [
        pl.BlockSpec((None, H, WC1), lambda n: (n, 0, 0)),
        pl.BlockSpec((None, Hl, WlC2), lambda n: (n, 0, 0)),
        _const_spec(p["R"].shape),
        _const_spec(p["B1s"].shape),
        _const_spec(p["B1u"].shape),
        _const_spec(p["b1"].shape),
        _const_spec(p["B2"].shape),
        _const_spec(p["b2"].shape),
    ]
    args = [skip, low, p["R"], p["B1s"], p["B1u"], p["b1"], p["B2"], p["b2"]]
    if final:
        in_specs += [_const_spec(p["Bf"].shape), _const_spec(p["bf"].shape)]
        args += [p["Bf"], p["bf"]]
        wc_out = W * p["Cfin"]
    else:
        wc_out = W * Cout
    out_shape = jax.ShapeDtypeStruct((N, H, wc_out), jnp.float32)
    out_specs = pl.BlockSpec((None, H, wc_out), lambda n: (n, 0, 0))
    scratch = [pltpu.VMEM((Hp, WC1), jnp.float32),
               pltpu.VMEM((Hp, WlC2), jnp.float32),
               pltpu.VMEM((Hp, W * Cout), jnp.float32)]
    return pl.pallas_call(
        kernel, out_shape=out_shape, grid=(N,),
        in_specs=in_specs, out_specs=out_specs, scratch_shapes=scratch,
        compiler_params=pltpu.CompilerParams(dimension_semantics=("parallel",)),
    )(*args)


# ===========================================================================
# UNet
# ===========================================================================
_ACTIVATIONS = {None: None, "Sigmoid": jax.nn.sigmoid, "ReLU": jax.nn.relu,
                "Tanh": jnp.tanh}


class UNetPallas:
    def __init__(self, depth, in_channels, out_channels=1, final_activation=None,
                 num_fmaps=64, fmap_inc_factor=2, downsample_factor=2,
                 kernel_size=3, padding="same", upsample_mode="nearest",
                 key=None, use_bf16=True):
        if padding not in ("same", "SAME"):
            # TODO(synk): 'valid' padding (and a non-identity CropAndConcat crop)
            # is not wired up; the test configuration uses 'same'.
            raise NotImplementedError("only 'same' padding is implemented")
        if upsample_mode != "nearest":
            raise NotImplementedError("only nearest upsampling is implemented")
        if kernel_size % 2 != 1:
            raise NotImplementedError("only odd kernel sizes are implemented")
        if depth < 2:
            raise NotImplementedError("depth must be >= 2")
        self.depth = depth
        self.in_channels = in_channels
        self.out_channels = out_channels
        self.final_activation = _ACTIVATIONS[final_activation]
        self.num_fmaps = num_fmaps
        self.fmap_inc_factor = fmap_inc_factor
        self.downsample_factor = downsample_factor
        self.kernel_size = kernel_size
        self.use_bf16 = use_bf16
        self._plans = {}

        key = jax.random.PRNGKey(0) if key is None else key

        def init_conv(k, ksize, cin, cout):
            kw, kb = jax.random.split(k)
            fan_in = cin * ksize * ksize
            # kaiming_normal_(nonlinearity='relu'): std = sqrt(2 / fan_in)
            w = (jax.random.normal(kw, (ksize, ksize, cin, cout), jnp.float32)
                 * math.sqrt(2.0 / fan_in))
            bound = 1.0 / math.sqrt(fan_in)      # PyTorch default bias init
            b = jax.random.uniform(kb, (cout,), jnp.float32, -bound, bound)
            return w, b

        keys = iter(jax.random.split(key, 4 * depth))

        self.left_raw = []
        for level in range(depth):
            cin, cout = self.compute_fmaps_encoder(level)
            self.left_raw.append(init_conv(next(keys), kernel_size, cin, cout)
                                 + init_conv(next(keys), kernel_size, cout, cout))
        self.right_raw = []
        for level in range(depth - 1):
            cin, cout = self.compute_fmaps_decoder(level)
            self.right_raw.append(init_conv(next(keys), kernel_size, cin, cout)
                                  + init_conv(next(keys), kernel_size, cout, cout))
        self.final_raw = init_conv(next(keys), 1,
                                   self.compute_fmaps_decoder(0)[1], out_channels)

    # ---- channel bookkeeping (matches the PyTorch module) ------------------
    def compute_fmaps_encoder(self, level):
        if level == 0:
            fin = self.in_channels
        else:
            fin = self.num_fmaps * self.fmap_inc_factor ** (level - 1)
        fout = self.num_fmaps * self.fmap_inc_factor ** level
        return fin, fout

    def compute_fmaps_decoder(self, level):
        fout = self.num_fmaps * self.fmap_inc_factor ** level
        concat_fmaps = self.compute_fmaps_encoder(level)[1]
        fin = concat_fmaps + self.num_fmaps * self.fmap_inc_factor ** (level + 1)
        return fin, fout

    # ---- per-(H, W) plan: fold weights into lane-dense banded matrices ------
    def _build_plan(self, H, W):
        f = self.downsample_factor
        K = self.kernel_size
        cd = jnp.bfloat16 if self.use_bf16 else jnp.float32
        pad = K // 2
        Hs = [H // (f ** l) for l in range(self.depth)]
        Ws = [W // (f ** l) for l in range(self.depth)]

        enc = []
        for level in range(self.depth):
            _cin, cout = self.compute_fmaps_encoder(level)
            w1, b1, w2, b2 = self.left_raw[level]
            Wl = Ws[level]
            pool = level < self.depth - 1
            enc.append(dict(
                W=Wl, Cout=cout, pool=pool,
                B1=_band_from_weights(w1, Wl, Wl).astype(cd),
                b1=_fold_bias(b1, Wl),
                B2=_band_from_weights(w2, Wl, Wl).astype(cd),
                b2=_fold_bias(b2, Wl),
                S=_pool_select_matrices(Wl, cout, f) if pool else None,
            ))

        dec = []
        for level in range(self.depth - 1):
            _cin, cout = self.compute_fmaps_decoder(level)
            c_skip = self.compute_fmaps_encoder(level)[1]
            w1, b1, w2, b2 = self.right_raw[level]
            Wl, Hl = Ws[level], Hs[level]
            Wlow, Hlow = Ws[level + 1], Hs[level + 1]
            entry = dict(
                W=Wl, Cout=cout, final=(level == 0),
                B1s=_band_from_weights(w1[:, :, :c_skip, :], Wl, Wl).astype(cd),
                B1u=_band_from_weights_upsampled(w1[:, :, c_skip:, :],
                                                 Wlow, Wl, f).astype(cd),
                b1=_fold_bias(b1, Wl),
                B2=_band_from_weights(w2, Wl, Wl).astype(cd),
                b2=_fold_bias(b2, Wl),
                R=_row_upsample_pad_matrix(Hl, Hlow, f, pad),
            )
            if level == 0:
                wf, bf = self.final_raw
                entry["Bf"] = _band_from_weights(wf, Wl, Wl)[0].astype(cd)
                entry["bf"] = _fold_bias(bf, Wl)
                entry["Cfin"] = self.out_channels
            dec.append(entry)

        return {"encoder": enc, "decoder": dec}

    # ---- forward ------------------------------------------------------------
    def __call__(self, x_nchw):
        N, C, H, W = x_nchw.shape
        if C != self.in_channels:
            raise ValueError("wrong number of input channels")
        f = self.downsample_factor
        if H % (f ** (self.depth - 1)) or W % (f ** (self.depth - 1)):
            raise ValueError("spatial dims must divide downsample_factor**(depth-1)")
        plan = self._plans.get((H, W))
        if plan is None:
            plan = self._build_plan(H, W)
            self._plans[(H, W)] = plan

        # NCHW (PyTorch) -> folded lane-dense (N, H, W*C); the reshape is free
        h = jnp.transpose(x_nchw.astype(jnp.float32), (0, 2, 3, 1)).reshape(N, H, W * C)

        skips = []
        for level in range(self.depth - 1):
            skip, h = encoder_block(h, plan["encoder"][level],
                                    K=self.kernel_size, f=f, bf16=self.use_bf16)
            skips.append(skip)
        h = encoder_block(h, plan["encoder"][-1],
                          K=self.kernel_size, f=f, bf16=self.use_bf16)

        for level in reversed(range(self.depth - 1)):
            h = decoder_block(skips[level], h, plan["decoder"][level],
                              K=self.kernel_size, bf16=self.use_bf16,
                              final_act=self.final_activation)

        out = h.reshape(N, H, W, self.out_channels)
        return jnp.transpose(out, (0, 3, 1, 2))            # -> NCHW


# ===========================================================================
# Pure-JAX reference (lax conv, NHWC) for the numerical self-check
# ===========================================================================
def unet_reference(model, x_nchw):
    f = model.downsample_factor

    def conv(h, w, b, relu):
        y = jax.lax.conv_general_dilated(
            h, w, window_strides=(1, 1), padding="SAME",
            dimension_numbers=("NHWC", "HWIO", "NHWC"))
        y = y + b
        return jnp.maximum(y, 0.0) if relu else y

    def block(h, prm):
        w1, b1, w2, b2 = prm
        return conv(conv(h, w1, b1, True), w2, b2, True)

    h = jnp.transpose(x_nchw, (0, 2, 3, 1)).astype(jnp.float32)
    skips = []
    for lvl in range(model.depth - 1):
        h = block(h, model.left_raw[lvl])
        skips.append(h)
        h = jax.lax.reduce_window(h, -jnp.inf, jax.lax.max,
                                  (1, f, f, 1), (1, f, f, 1), "VALID")
    h = block(h, model.left_raw[-1])
    for lvl in reversed(range(model.depth - 1)):
        up = jnp.repeat(jnp.repeat(h, f, axis=1), f, axis=2)
        sk = skips[lvl]
        oy = (sk.shape[1] - up.shape[1]) // 2
        ox = (sk.shape[2] - up.shape[2]) // 2
        sk = sk[:, oy:oy + up.shape[1], ox:ox + up.shape[2], :]
        h = block(jnp.concatenate([sk, up], axis=-1), model.right_raw[lvl])
    wf, bf = model.final_raw
    out = conv(h, wf, bf, False)
    if model.final_activation is not None:
        out = model.final_activation(out)
    return jnp.transpose(out, (0, 3, 1, 2))


if __name__ == "__main__":
    key = jax.random.PRNGKey(0)
    k_param, k_x = jax.random.split(key)
    x = jax.random.normal(k_x, (2, 4, 16, 16), jnp.float32)   # NCHW, like PyTorch

    cfg = dict(depth=2, in_channels=4, out_channels=1, final_activation=None,
               num_fmaps=8, fmap_inc_factor=2, downsample_factor=2,
               kernel_size=3, padding="same", key=k_param)

    # exact f32 path: numerical self-check against the pure-JAX reference
    model_f32 = UNetPallas(use_bf16=False, **cfg)
    y_f32 = jax.block_until_ready(model_f32(x))
    y_ref = jax.block_until_ready(unet_reference(model_f32, x))
    assert y_f32.shape == (2, 1, 16, 16), y_f32.shape
    rel = float(jnp.linalg.norm(y_f32 - y_ref) / (jnp.linalg.norm(y_ref) + 1e-12))
    assert rel < 5e-2, f"f32 Pallas UNet deviates from reference: rel={rel}"

    # default path: bf16 MXU inputs with f32 accumulation (v6e / v7x native)
    model = UNetPallas(use_bf16=True, **cfg)
    y = jax.block_until_ready(model(x))
    assert y.shape == (2, 1, 16, 16), y.shape
    assert bool(jnp.all(jnp.isfinite(y)))
    rel_bf16 = float(jnp.linalg.norm(y - y_ref) / (jnp.linalg.norm(y_ref) + 1e-12))
    assert rel_bf16 < 1e-1, f"bf16 Pallas UNet deviates from reference: rel={rel_bf16}"
    print("KERNEL_OK")
</pallas_src>

<mosaic_0001>
module attributes {stable_mosaic.version = 11 : i64} {
  func.func @_encoder_kernel(%arg0: i32, %arg1: memref<1x16x64xf32, #tpu.memory_space<vmem>>, %arg2: memref<3x64x128xf32, #tpu.memory_space<vmem>>, %arg3: memref<1x128xf32, #tpu.memory_space<vmem>>, %arg4: memref<3x128x128xf32, #tpu.memory_space<vmem>>, %arg5: memref<1x128xf32, #tpu.memory_space<vmem>>, %arg6: memref<2x128x64xf32, #tpu.memory_space<vmem>>, %arg7: memref<1x16x128xf32, #tpu.memory_space<vmem>>, %arg8: memref<1x8x64xf32, #tpu.memory_space<vmem>>, %arg9: memref<18x64xf32, #tpu.memory_space<vmem>>, %arg10: memref<18x128xf32, #tpu.memory_space<vmem>>) attributes {dimension_semantics = [#tpu.dimension_semantics<parallel>], iteration_bounds = array<i64: 2>, scalar_prefetch = 0 : i64, scratch_operands = 2 : i64, tpu.core_type = #tpu.core_type<tc>, window_params = [{transform_indices = @transform_0, window_bounds = array<i64: 1, 16, 64>}, {pipeline_mode = #tpu.pipeline_mode<synchronous>, transform_indices = @transform_1, window_bounds = array<i64: 3, 64, 128>}, {pipeline_mode = #tpu.pipeline_mode<synchronous>, transform_indices = @transform_2, window_bounds = array<i64: 1, 128>}, {pipeline_mode = #tpu.pipeline_mode<synchronous>, transform_indices = @transform_3, window_bounds = array<i64: 3, 128, 128>}, {pipeline_mode = #tpu.pipeline_mode<synchronous>, transform_indices = @transform_4, window_bounds = array<i64: 1, 128>}, {pipeline_mode = #tpu.pipeline_mode<synchronous>, transform_indices = @transform_5, window_bounds = array<i64: 2, 128, 64>}, {transform_indices = @transform_6, window_bounds = array<i64: 1, 16, 128>}, {transform_indices = @transform_7, window_bounds = array<i64: 1, 8, 64>}]} {
    %cst = arith.constant 0.000000e+00 : f32
    %0 = vector.broadcast %cst : f32 to vector<18x64xf32>
    %c0 = arith.constant 0 : index
    %c0_0 = arith.constant 0 : index
    %1 = vector.load %arg9[%c0, %c0_0] : memref<18x64xf32, #tpu.memory_space<vmem>>, vector<18x64xf32>
    tpu.vector_store %arg9[%c0, %c0_0], %0 {strides = array<i32>} : memref<18x64xf32, #tpu.memory_space<vmem>>, vector<18x64xf32>,
    %c0_1 = arith.constant 0 : index
    %c0_2 = arith.constant 0 : index
    %c0_3 = arith.constant 0 : index
    %2 = vector.load %arg1[%c0_1, %c0_2, %c0_3] : memref<1x16x64xf32, #tpu.memory_space<vmem>>, vector<1x16x64xf32>
    %3 = vector.shape_cast %2 : vector<1x16x64xf32> to vector<16x64xf32>
    %c1 = arith.constant 1 : index
    %c0_4 = arith.constant 0 : index
    %4 = vector.load %arg9[%c1, %c0_4] : memref<18x64xf32, #tpu.memory_space<vmem>>, vector<16x64xf32>
    tpu.vector_store %arg9[%c1, %c0_4], %3 {strides = array<i32>} : memref<18x64xf32, #tpu.memory_space<vmem>>, vector<16x64xf32>,
    %cst_5 = arith.constant 0.000000e+00 : f32
    %5 = vector.broadcast %cst_5 : f32 to vector<16x128xf32>
    %c0_6 = arith.constant 0 : index
    %c0_7 = arith.constant 0 : index
    %6 = vector.load %arg9[%c0_6, %c0_7] : memref<18x64xf32, #tpu.memory_space<vmem>>, vector<16x64xf32>
    %c0_8 = arith.constant 0 : index
    %c0_9 = arith.constant 0 : index
    %c0_10 = arith.constant 0 : index
    %7 = vector.load %arg2[%c0_8, %c0_9, %c0_10] : memref<3x64x128xf32, #tpu.memory_space<vmem>>, vector<1x64x128xf32>
    %8 = vector.shape_cast %7 : vector<1x64x128xf32> to vector<64x128xf32>
    %cst_11 = arith.constant dense<0.000000e+00> : vector<16x128xf32>
    %9 = tpu.matmul %6, %8, %cst_11 {dimension_numbers = #tpu.dot_dimension_numbers<[1], [0], [0], [1], [0, 0, 1, 1], [], []>} : vector<16x64xf32>, vector<64x128xf32>, vector<16x128xf32> -> vector<16x128xf32>
    %10 = arith.addf %5, %9 : vector<16x128xf32>
    %c1_12 = arith.constant 1 : index
    %c0_13 = arith.constant 0 : index
    %11 = vector.load %arg9[%c1_12, %c0_13] : memref<18x64xf32, #tpu.memory_space<vmem>>, vector<16x64xf32>
    %c1_14 = arith.constant 1 : index
    %c0_15 = arith.constant 0 : index
    %c0_16 = arith.constant 0 : index
    %12 = vector.load %arg2[%c1_14, %c0_15, %c0_16] : memref<3x64x128xf32, #tpu.memory_space<vmem>>, vector<1x64x128xf32>
    %13 = vector.shape_cast %12 : vector<1x64x128xf32> to vector<64x128xf32>
    %cst_17 = arith.constant dense<0.000000e+00> : vector<16x128xf32>
    %14 = tpu.matmul %11, %13, %cst_17 {dimension_numbers = #tpu.dot_dimension_numbers<[1], [0], [0], [1], [0, 0, 1, 1], [], []>} : vector<16x64xf32>, vector<64x128xf32>, vector<16x128xf32> -> vector<16x128xf32>
    %15 = arith.addf %10, %14 : vector<16x128xf32>
    %c2 = arith.constant 2 : index
    %c0_18 = arith.constant 0 : index
    %16 = vector.load %arg9[%c2, %c0_18] : memref<18x64xf32, #tpu.memory_space<vmem>>, vector<16x64xf32>
    %c2_19 = arith.constant 2 : index
    %c0_20 = arith.constant 0 : index
    %c0_21 = arith.constant 0 : index
    %17 = vector.load %arg2[%c2_19, %c0_20, %c0_21] : memref<3x64x128xf32, #tpu.memory_space<vmem>>, vector<1x64x128xf32>
    %18 = vector.shape_cast %17 : vector<1x64x128xf32> to vector<64x128xf32>
    %cst_22 = arith.constant dense<0.000000e+00> : vector<16x128xf32>
    %19 = tpu.matmul %16, %18, %cst_22 {dimension_numbers = #tpu.dot_dimension_numbers<[1], [0], [0], [1], [0, 0, 1, 1], [], []>} : vector<16x64xf32>, vector<64x128xf32>, vector<16x128xf32> -> vector<16x128xf32>
    %20 = arith.addf %15, %19 : vector<16x128xf32>
    %cst_23 = arith.constant 0.000000e+00 : f32
    %21 = vector.broadcast %cst_23 : f32 to vector<18x128xf32>
    %c0_24 = arith.constant 0 : index
    %c0_25 = arith.constant 0 : index
    %22 = vector.load %arg10[%c0_24, %c0_25] : memref<18x128xf32, #tpu.memory_space<vmem>>, vector<18x128xf32>
    tpu.vector_store %arg10[%c0_24, %c0_25], %21 {strides = array<i32>} : memref<18x128xf32, #tpu.memory_space<vmem>>, vector<18x128xf32>,
    %c0_26 = arith.constant 0 : index
    %c0_27 = arith.constant 0 : index
    %23 = vector.load %arg3[%c0_26, %c0_27] : memref<1x128xf32, #tpu.memory_space<vmem>>, vector<1x128xf32>
    %24 = vector.broadcast %23 : vector<1x128xf32> to vector<16x128xf32>
    %25 = arith.addf %20, %24 : vector<16x128xf32>
    %cst_28 = arith.constant 0.000000e+00 : f32
    %26 = vector.broadcast %cst_28 : f32 to vector<16x128xf32>
    %27 = arith.maximumf %25, %26 : vector<16x128xf32>
    %c1_29 = arith.constant 1 : index
    %c0_30 = arith.constant 0 : index
    %28 = vector.load %arg10[%c1_29, %c0_30] : memref<18x128xf32, #tpu.memory_space<vmem>>, vector<16x128xf32>
    tpu.vector_store %arg10[%c1_29, %c0_30], %27 {strides = array<i32>} : memref<18x128xf32, #tpu.memory_space<vmem>>, vector<16x128xf32>,
    %cst_31 = arith.constant 0.000000e+00 : f32
    %29 = vector.broadcast %cst_31 : f32 to vector<16x128xf32>
    %c0_32 = arith.constant 0 : index
    %c0_33 = arith.constant 0 : index
    %30 = vector.load %arg10[%c0_32, %c0_33] : memref<18x128xf32, #tpu.memory_space<vmem>>, vector<16x128xf32>
    %c0_34 = arith.constant 0 : index
    %c0_35 = arith.constant 0 : index
    %c0_36 = arith.constant 0 : index
    %31 = vector.load %arg4[%c0_34, %c0_35, %c0_36] : memref<3x128x128xf32, #tpu.memory_space<vmem>>, vector<1x128x128xf32>
    %32 = vector.shape_cast %31 : vector<1x128x128xf32> to vector<128x128xf32>
    %cst_37 = arith.constant dense<0.000000e+00> : vector<16x128xf32>
    %33 = tpu.matmul %30, %32, %cst_37 {dimension_numbers = #tpu.dot_dimension_numbers<[1], [0], [0], [1], [0, 0, 1, 1], [], []>} : vector<16x128xf32>, vector<128x128xf32>, vector<16x128xf32> -> vector<16x128xf32>
    %34 = arith.addf %29, %33 : vector<16x128xf32>
    %c1_38 = arith.constant 1 : index
    %c0_39 = arith.constant 0 : index
    %35 = vector.load %arg10[%c1_38, %c0_39] : memref<18x128xf32, #tpu.memory_space<vmem>>, vector<16x128xf32>
    %c1_40 = arith.constant 1 : index
    %c0_41 = arith.constant 0 : index
    %c0_42 = arith.constant 0 : index
    %36 = vector.load %arg4[%c1_40, %c0_41, %c0_42] : memref<3x128x128xf32, #tpu.memory_space<vmem>>, vector<1x128x128xf32>
    %37 = vector.shape_cast %36 : vector<1x128x128xf32> to vector<128x128xf32>
    %cst_43 = arith.constant dense<0.000000e+00> : vector<16x128xf32>
    %38 = tpu.matmul %35, %37, %cst_43 {dimension_numbers = #tpu.dot_dimension_numbers<[1], [0], [0], [1], [0, 0, 1, 1], [], []>} : vector<16x128xf32>, vector<128x128xf32>, vector<16x128xf32> -> vector<16x128xf32>
    %39 = arith.addf %34, %38 : vector<16x128xf32>
    %c2_44 = arith.constant 2 : index
    %c0_45 = arith.constant 0 : index
    %40 = vector.load %arg10[%c2_44, %c0_45] : memref<18x128xf32, #tpu.memory_space<vmem>>, vector<16x128xf32>
    %c2_46 = arith.constant 2 : index
    %c0_47 = arith.constant 0 : index
    %c0_48 = arith.constant 0 : index
    %41 = vector.load %arg4[%c2_46, %c0_47, %c0_48] : memref<3x128x128xf32, #tpu.memory_space<vmem>>, vector<1x128x128xf32>
    %42 = vector.shape_cast %41 : vector<1x128x128xf32> to vector<128x128xf32>
    %cst_49 = arith.constant dense<0.000000e+00> : vector<16x128xf32>
    %43 = tpu.matmul %40, %42, %cst_49 {dimension_numbers = #tpu.dot_dimension_numbers<[1], [0], [0], [1], [0, 0, 1, 1], [], []>} : vector<16x128xf32>, vector<128x128xf32>, vector<16x128xf32> -> vector<16x128xf32>
    %44 = arith.addf %39, %43 : vector<16x128xf32>
    %c0_50 = arith.constant 0 : index
    %c0_51 = arith.constant 0 : index
    %45 = vector.load %arg5[%c0_50, %c0_51] : memref<1x128xf32, #tpu.memory_space<vmem>>, vector<1x128xf32>
    %46 = vector.broadcast %45 : vector<1x128xf32> to vector<16x128xf32>
    %47 = arith.addf %44, %46 : vector<16x128xf32>
    %cst_52 = arith.constant 0.000000e+00 : f32
    %48 = vector.broadcast %cst_52 : f32 to vector<16x128xf32>
    %49 = arith.maximumf %47, %48 : vector<16x128xf32>
    %c0_53 = arith.constant 0 : index
    %c0_54 = arith.constant 0 : index
    %c0_55 = arith.constant 0 : index
    %50 = vector.load %arg7[%c0_53, %c0_54, %c0_55] : memref<1x16x128xf32, #tpu.memory_space<vmem>>, vector<1x16x128xf32>
    %51 = vector.shape_cast %50 : vector<1x16x128xf32> to vector<16x128xf32>
    %52 = vector.shape_cast %49 : vector<16x128xf32> to vector<1x16x128xf32>
    tpu.vector_store %arg7[%c0_53, %c0_54, %c0_55], %52 {strides = array<i32>} : memref<1x16x128xf32, #tpu.memory_space<vmem>>, vector<1x16x128xf32>,
    %c0_56 = arith.constant 0 : index
    %c0_57 = arith.constant 0 : index
    %c0_58 = arith.constant 0 : index
    %53 = tpu.strided_load %arg7[%c0_56, %c0_57, %c0_58] {strides = array<i32: 1, 2, 1>} : memref<1x16x128xf32, #tpu.memory_space<vmem>>, vector<1x8x128xf32>
    %54 = vector.shape_cast %53 : vector<1x8x128xf32> to vector<8x128xf32>
    %c0_59 = arith.constant 0 : index
    %c1_60 = arith.constant 1 : index
    %c0_61 = arith.constant 0 : index
    %55 = tpu.strided_load %arg7[%c0_59, %c1_60, %c0_61] {strides = array<i32: 1, 2, 1>} : memref<1x16x128xf32, #tpu.memory_space<vmem>>, vector<1x8x128xf32>
    %56 = vector.shape_cast %55 : vector<1x8x128xf32> to vector<8x128xf32>
    %57 = arith.maximumf %54, %56 : vector<8x128xf32>
    %c0_62 = arith.constant 0 : index
    %c0_63 = arith.constant 0 : index
    %c0_64 = arith.constant 0 : index
    %58 = vector.load %arg6[%c0_62, %c0_63, %c0_64] : memref<2x128x64xf32, #tpu.memory_space<vmem>>, vector<1x128x64xf32>
    %59 = vector.shape_cast %58 : vector<1x128x64xf32> to vector<128x64xf32>
    %cst_65 = arith.constant dense<0.000000e+00> : vector<8x64xf32>
    %60 = tpu.matmul %57, %59, %cst_65 {dimension_numbers = #tpu.dot_dimension_numbers<[1], [0], [0], [1], [0, 0, 1, 1], [], []>} : vector<8x128xf32>, vector<128x64xf32>, vector<8x64xf32> -> vector<8x64xf32>
    %c1_66 = arith.constant 1 : index
    %c0_67 = arith.constant 0 : index
    %c0_68 = arith.constant 0 : index
    %61 = vector.load %arg6[%c1_66, %c0_67, %c0_68] : memref<2x128x64xf32, #tpu.memory_space<vmem>>, vector<1x128x64xf32>
    %62 = vector.shape_cast %61 : vector<1x128x64xf32> to vector<128x64xf32>
    %cst_69 = arith.constant dense<0.000000e+00> : vector<8x64xf32>
    %63 = tpu.matmul %57, %62, %cst_69 {dimension_numbers = #tpu.dot_dimension_numbers<[1], [0], [0], [1], [0, 0, 1, 1], [], []>} : vector<8x128xf32>, vector<128x64xf32>, vector<8x64xf32> -> vector<8x64xf32>
    %64 = arith.maximumf %60, %63 : vector<8x64xf32>
    %c0_70 = arith.constant 0 : index
    %c0_71 = arith.constant 0 : index
    %c0_72 = arith.constant 0 : index
    %65 = vector.load %arg8[%c0_70, %c0_71, %c0_72] : memref<1x8x64xf32, #tpu.memory_space<vmem>>, vector<1x8x64xf32>
    %66 = vector.shape_cast %65 : vector<1x8x64xf32> to vector<8x64xf32>
    %67 = vector.shape_cast %64 : vector<8x64xf32> to vector<1x8x64xf32>
    tpu.vector_store %arg8[%c0_70, %c0_71, %c0_72], %67 {strides = array<i32>} : memref<1x8x64xf32, #tpu.memory_space<vmem>>, vector<1x8x64xf32>,
    return
  }
  func.func @transform_0(%arg0: i32) -> (i32, i32, i32) {
    %c0_i32 = arith.constant 0 : i32
    %c0_i32_0 = arith.constant 0 : i32
    %c0_i32_1 = arith.constant 0 : i32
    return %arg0, %c0_i32, %c0_i32_0 : i32, i32, i32
  }
  func.func @transform_1(%arg0: i32) -> (i32, i32, i32) {
    %c0_i32 = arith.constant 0 : i32
    %c0_i32_0 = arith.constant 0 : i32
    %c0_i32_1 = arith.constant 0 : i32
    %c0_i32_2 = arith.constant 0 : i32
    return %c0_i32, %c0_i32_0, %c0_i32_1 : i32, i32, i32
  }
  func.func @transform_2(%arg0: i32) -> (i32, i32) {
    %c0_i32 = arith.constant 0 : i32
    %c0_i32_0 = arith.constant 0 : i32
    %c0_i32_1 = arith.constant 0 : i32
    return %c0_i32, %c0_i32_0 : i32, i32
  }
  func.func @transform_3(%arg0: i32) -> (i32, i32, i32) {
    %c0_i32 = arith.constant 0 : i32
    %c0_i32_0 = arith.constant 0 : i32
    %c0_i32_1 = arith.constant 0 : i32
    %c0_i32_2 = arith.constant 0 : i32
    return %c0_i32, %c0_i32_0, %c0_i32_1 : i32, i32, i32
  }
  func.func @transform_4(%arg0: i32) -> (i32, i32) {
    %c0_i32 = arith.constant 0 : i32
    %c0_i32_0 = arith.constant 0 : i32
    %c0_i32_1 = arith.constant 0 : i32
    return %c0_i32, %c0_i32_0 : i32, i32
  }
  func.func @transform_5(%arg0: i32) -> (i32, i32, i32) {
    %c0_i32 = arith.constant 0 : i32
    %c0_i32_0 = arith.constant 0 : i32
    %c0_i32_1 = arith.constant 0 : i32
    %c0_i32_2 = arith.constant 0 : i32
    return %c0_i32, %c0_i32_0, %c0_i32_1 : i32, i32, i32
  }
  func.func @transform_6(%arg0: i32) -> (i32, i32, i32) {
    %c0_i32 = arith.constant 0 : i32
    %c0_i32_0 = arith.constant 0 : i32
    %c0_i32_1 = arith.constant 0 : i32
    return %arg0, %c0_i32, %c0_i32_0 : i32, i32, i32
  }
  func.func @transform_7(%arg0: i32) -> (i32, i32, i32) {
    %c0_i32 = arith.constant 0 : i32
    %c0_i32_0 = arith.constant 0 : i32
    %c0_i32_1 = arith.constant 0 : i32
    return %arg0, %c0_i32, %c0_i32_0 : i32, i32, i32
  }
}

</mosaic_0001>

<bundles_post_ra>
// kernel: tpu_custom_call.1
= control target key start
LH: loop header
LB: loop body
LE: loop exit
PB: predicated region body
PF: predicated region fallthrough
CT: control target
= control target key end

     0   :  { %13 = vsyncpa [#allocation5], 0  ;;  %s2689_s0 = inlined_call_operand.hbm [shape: f32[2,16,64], index: 0, kind: input, shape index: {}]   ;;  %s2690_s1 = inlined_call_operand.hbm [shape: f32[3,64,128], index: 1, kind: input, shape index: {}]   ;;  %s2691_s2 = inlined_call_operand.vmem [shape: f32[1,128], index: 2, kind: input, shape index: {}]   ;;  %s2692_s3 = inlined_call_operand.vmem [shape: f32[3,128,128], index: 3, kind: input, shape index: {}]   ;;  %s2693_s4 = inlined_call_operand.vmem [shape: f32[1,128], index: 4, kind: input, shape index: {}]   ;;  %s2694_s5 = inlined_call_operand.vmem [shape: f32[2,128,64], index: 5, kind: input, shape index: {}]   ;;  %s2695_s6 = inlined_call_operand.hbm [shape: f32[2,16,128], index: 6, kind: output, shape index: {0}]   ;;  %s2696_s7 = inlined_call_operand.hbm [shape: f32[2,8,64], index: 7, kind: output, shape index: {1}]  }
   0x1   :  { %15 = vsyncpa [#allocation5 + $0x1], 0 }
   0x2   :  { %16 = vsyncpa [#allocation8], 0 }
   0x3   :  { %17 = vsyncpa [#allocation6], 0 }
   0x4   :  { %19 = vsyncpa [#allocation6 + $0x1], 0 }
   0x5   :  { %20 = vsyncpa [#allocation11], 0 }
   0x6   :  { %22 = vsyncpa [#allocation11 + $0x1], 0  ;;  %s2157_s24 = smov 0   ;;  %s2159_s25 = smov 0  }
   0x7   :  { %s2161_s26 = smov 0   ;;  %s2163_s27 = smov 0  }
   0x8 LB: > { %s2178_s28 = sadd.s32 4294967295, %s2104_s27   ;;  %s1247_s29 = sadd.s32 4294967294, %s2104_s27   ;;  %s2104_s27 = sphi %s2163_s27, %s2718_s27   ;;  %s2100_s26 = sphi %s2161_s26, %s2717_s26   ;;  %s2096_s25 = sphi %s2159_s25, %s2716_s25   ;;  %s2092_s24 = sphi %s2157_s24, %s2715_s24  }
   0x9   : > { %p48_p0 = scmp.ne.s32.totalorder %s2096_s25, %s2092_s24  ;;  %p2697_p1 = scmp.eq.s32.totalorder %s2178_s28, 0 }
   0xa   : > { %p183_p3 = scmp.eq.s32.totalorder %s1247_s29, 1  ;;  %p1248_p5 = scmp.ge.s32.totalorder %s2104_s27, 1 }
   0xb   : > { %p2187_p4 = por %p2697_p1, %p48_p0  ;;  %p216_p7 = scmp.lt.s32.totalorder %s2104_s27, 3 }
   0xc   : > { %p2192_p6 = por %p183_p3, %p48_p0  ;;  %s2106_s10 = smov [#allocation7]  }
   0xd   : > { %s2701_s30 = scalar_select %p2187_p4, 1, 0 }
   0xe   : > { %s2702_s8 = scalar_select %p2192_p6, 1, 0 }
   0xf   : > { %p2197_p8 = pnand %p1248_p5, %p216_p7  ;;  %s228_s11 = sshll.u32 %s2106_s10, 4  ;;  %s2201_s11 = int_to_ptr.vmem [resolvable:$true] %s228_s11 }
  0x10   : > { %s2213_s13 = sadd.s32 1, %s2104_s27   ;;  %s35_s14 = sadd.s32 1, %s2100_s26 }
  0x11   : > { %s2703_s9 = scalar_select %p2197_p8, 1, 0 }
  0x12   : > { %p1885_p9 = pneg %p2197_p8  ;;  %s32_s15 = ssub.s32 %s2104_s27, %s2213_s13 }
  0x13   : > { %s1944_s18 = scalar_lea.hbm %s2690_s1, 3072 }
  0x14   : > { %p2208_p11 = pnand %p1885_p9, %p2697_p1  ;;  %p1945_p12 = scmp.ne.s32.totalorder %s2690_s1, %s1944_s18 }
  0x15   : > { %p1951_p5 = scmp.lt.u32.totalorder %s1944_s18, %s2690_s1 }
  0x16   : > { %p1946_p13 = pneg %p2208_p11 }
  0x18   : > { %p1947_p0 = pnand %p1946_p13, %p1945_p12 }
  0x1a   : > { %p1948_p3 = pneg %p1947_p0 }
  0x1c   : > { %p1953_p7 = pnand %p1951_p5, %p1948_p3 }
  0x1e   : > { %1956 = shalt.err (!%p1953_p7)
}
  0x1f   : > { %s1957_s23 = scalar_lea.vmem %s2201_s11, 3072  ;;  %p1965_p2 = scmp.lt.s32.totalorder %s2201_s11, %s2201_s11 }
  0x20   : > { %p1958_p9 = scmp.ne.s32.totalorder %s2201_s11, %s1957_s23  ;;  %p1966_p6 = scmp.lt.s32.totalorder %s1957_s23, %s1957_s23 }
  0x22   : > { %p1960_p10 = pnand %p1958_p9, %p1946_p13  ;;  %p1967_p4 = por %p1966_p6, %p1965_p2 }
  0x24   : > { %p1961_p1 = pneg %p1960_p10 }
  0x26   : > { %p1968_p8 = pnand %p1967_p4, %p1961_p1 }
  0x28   : > { %1971 = shalt.err (!%p1968_p8)
}
  0x29   : > { %s2700_s29 = smov 128   ;;  %s2108_s10 = smov 8  }
  0x2a   : > { %1888 = dma.hbm_to_vmem [thread:$0]  (!%p2208_p11), %s2690_s1, 3072, %s2201_s11, [#allocation8], %s2700_s29, %s2700_s29, %s2108_s10  }
  0x2b   : > { %p33_p1 = scmp.eq.s32.totalorder %s32_s15, 0  ;;  %p42_p2 = scmp.ne.s32.totalorder %s2100_s26, %s2096_s25 }
  0x2c   : > { %p43_p4 = scmp.eq.s32.totalorder %s2104_s27, 0  ;;  %p1901_p6 = scmp.lt.s32.totalorder %s2104_s27, 2 }
  0x2d   : > { %s2247_s18 = scalar_select %p33_p1, %s2100_s26, %s35_s14  }
  0x2e   : > { %p44_p8 = por %p43_p4, %p42_p2  ;;  %p2705_p10 = scmp.eq.s32.totalorder %s2178_s28, 1 }
  0x2f   : > { %s254_s12 = sand.u32 1, %s2100_s26   ;;  %s1323_s20 = sshll.u32 %s2104_s27, 8 }
  0x30   : > { %p2251_p12 = por %p2705_p10, %p42_p2  ;;  %s1251_s21 = sshll.u32 %s254_s12, 4 }
  0x31   : > { %s2260_s16 = scalar_lea.hbm %s2689_s0, %s1323_s20  ;;  %s258_s11 = scalar_lea.vmem [#allocation4], %s1251_s21 }
  0x32   : > { %s265_s14 = sshll.u32 %s258_s11, 4  ;;  %p2262_p11 = pnand %p1901_p6, %p44_p8  ;;  %s2266_s14 = int_to_ptr.vmem [resolvable:$true] %s265_s14 }
  0x33   : > { %s2268_s17 = scalar_lea.sflag [#allocation5], %s254_s12  ;;  %s1972_s29 = scalar_lea.hbm %s2260_s16, 256 }
  0x34   : > { %p1973_p13 = scmp.ne.s32.totalorder %s2260_s16, %s1972_s29  ;;  %p1974_p0 = pneg %p2262_p11 }
  0x35   : > { %s1977_s22 = scalar_lea.hbm %s2689_s0, 512  ;;  %p1978_p7 = scmp.lt.u32.totalorder %s2260_s16, %s2689_s0 }
  0x36   : > { %p1975_p3 = pnand %p1974_p0, %p1973_p13  ;;  %p1979_p9 = scmp.lt.u32.totalorder %s1977_s22, %s1972_s29 }
  0x37   : > { %p1981_p2 = scmp.lt.u32.totalorder %s1972_s29, %s2260_s16 }
  0x38   : > { %p1976_p5 = pneg %p1975_p3  ;;  %p1980_p1 = por %p1979_p9, %p1978_p7 }
  0x3a   : > { %p1982_p4 = por %p1981_p2, %p1980_p1 }
  0x3c   : > { %p1983_p6 = pnand %p1982_p4, %p1976_p5 }
  0x3e   : > { %1986 = shalt.err (!%p1983_p6)
}
  0x3f   : > { %s1987_s12 = scalar_lea.vmem %s2266_s14, 256  ;;  %s2109_s20 = smov [#allocation4]  }
  0x40   : > { %p1988_p8 = scmp.ne.s32.totalorder %s2266_s14, %s1987_s12  ;;  %s1992_s21 = sshll.u32 %s2109_s20, 4  ;;  %s1993_s21 = int_to_ptr.vmem [resolvable:$false] %s1992_s21 }
  0x41   : > { %s1994_s23 = scalar_lea.vmem %s1993_s21, 512  ;;  %p1995_p3 = scmp.lt.s32.totalorder %s2266_s14, %s1993_s21 }
  0x42   : > { %p1990_p10 = pnand %p1988_p8, %p1974_p0  ;;  %p1996_p7 = scmp.lt.s32.totalorder %s1994_s23, %s1987_s12 }
  0x44   : > { %p1991_p13 = pneg %p1990_p10  ;;  %p1997_p9 = por %p1996_p7, %p1995_p3 }
  0x46   : > { %p1998_p1 = pnand %p1997_p9, %p1991_p13 }
  0x48   : > { %2001 = shalt.err (!%p1998_p1)
}
  0x49   : > { %s2708_s29 = smov 128   ;;  %p2709_p0 = scmp.ne.s32.totalorder %s2703_s9, 0 }
  0x4a   : > { %1892 = dma.hbm_to_vmem [thread:$0]  (!%p2262_p11), %s2260_s16, 256, %s2266_s14, %s2268_s17, %s2708_s29, %s2708_s29, %s2108_s10  }
  0x4b   : > { %277 = sbr.rel (%p2709_p0) target bundleno = 906 (0x38a), region = 44  ;;  %s2302_s22 = sand.u32 (!%p2709_p0), 1, %s2096_s25  }
  0x4c   : > { %s1255_s11 = sshll.u32 (!%p2709_p0), %s2302_s22, 4  ;;  %s280_s12 = scalar_lea.sflag (!%p2709_p0), [#allocation5], %s2302_s22 }
  0x4d   : > { %s283_s15 = scalar_lea.vmem (!%p2709_p0), [#allocation4], %s1255_s11  ;;  %p2710_p5 = scmp.ne.s32.totalorder (!%p2709_p0), %s2701_s30, 0 }
  0x52   : > { %2075 = dma.done.wait (%p2710_p5), %s280_s12, 256  }
  0x53   : > { %2077 = vsyncadd (%p2710_p5), %s280_s12, 4294967040  ;;  %p2711_p11 = scmp.eq.s32.totalorder %s2178_s28, 0 }
  0x55   : > { %2079 = dma.done.wait (%p2711_p11), [#allocation8], 3072   ;;  %p2712_p2 = pmov %p2711_p11 }
  0x56   : > { %vm323_vm0 = vcmask 523264   ;;  %vm326_vm1 = vcmask 517120   ;;  %v2110_v0 = vmov 0.0   ;;  %v345_v1 = vld [vmem:[#allocation7 + $0x40] sm:$0xff]  ;;  %v346_v2 = vld [vmem:[#allocation7 + $0x48] sm:$0xff]  ;;  %v347_v3 = vld [vmem:[#allocation7 + $0x50] sm:$0xff] }
  0x57   : > { %2081 = vsyncadd (%p2712_p2), [#allocation8], 4294964224  ;;  %324 = vst.msk [vmem:[#allocation2] sm:$0xff] %vm323_vm0, %v2110_v0  ;;  %v1675_v4 = vpack.c.bf16 %v346_v2, %v345_v1  ;;  %v348_v5 = vld [vmem:[#allocation7 + $0x58] sm:$0xff]  ;;  %v349_v7 = vld [vmem:[#allocation7 + $0x60] sm:$0xff]  ;;  %vm2112_vm2 = vmmov 0  }
  0x58   : > { %325 = vst.msk [vmem:[#allocation2 + $0x8] sm:$0xff] %vm323_vm0, %v2110_v0  ;;  %609 = vst [vmem:[#allocation3] sm:$0xff] %v2110_v0  ;;  %v1679_v6 = vpack.c.bf16 %v348_v5, %v347_v3  ;;  %v350_v8 = vld [vmem:[#allocation7 + $0x68] sm:$0xff]  ;;  %v328_v9 = vld [vmem:[%s283_s15] sm:$0xff]  ;;  %s2543_s30 = scalar_lea.vmem [#allocation9], %s1255_s11  ;;  %s1324_s23 = sshll.u32 %s2178_s28, 8 }
  0x59   : > { %610 = vst [vmem:[#allocation3 + $0x8] sm:$0xff] %v2110_v0  ;;  %611 = vst [vmem:[#allocation3 + $0x10] sm:$0x3] %v2110_v0  ;;  %1676 = vmatprep.subr.bf16.mxu0 %v1675_v4  ;;  %v329_v10 = vld [vmem:[%s283_s15 + $0x8] sm:$0xff]  ;;  %v1683_v11 = vpack.c.bf16 %v350_v8, %v349_v7  ;;  %v351_v12 = vld [vmem:[#allocation7 + $0x70] sm:$0xff]  ;;  %s2610_s15 = scalar_lea.hbm %s2695_s6, %s1324_s23  ;;  %s1119_s9 = sshll.u32 %s2543_s30, 4  ;;  %s2613_s9 = int_to_ptr.vmem [resolvable:$true] %s1119_s9 }
  0x5a   : > { %327 = vst.msk [vmem:[#allocation2 + $0x10] sm:$0x3] %vm326_vm1, %v2110_v0  ;;  %1678 = vmatpush3.bf16.msra.mxu0 %v1675_v4  ;;  %v352_v13 = vld [vmem:[#allocation7 + $0x78] sm:$0xff]  ;;  %v1266_v14 = vld [vmem:[%s2692_s3 + $0x80] sm:$0xff]  ;;  %v1268_v17 = vld [vmem:[%s2692_s3 + $0x90] sm:$0xff]  ;;  %s1101_s10 = scalar_lea.sflag [#allocation6], %s2302_s22 }
  0x5b   : > { %330 = vst.msk [vmem:[#allocation2 + $0x1] sm:$0xff] %vm323_vm0, %v328_v9  ;;  %331 = vst.msk [vmem:[#allocation2 + $0x9] sm:$0xff] %vm323_vm0, %v329_v10  ;;  %1680 = vmatprep.subr.bf16.mxu0 %v1679_v6  ;;  %v1687_v15 = vpack.c.bf16 %v352_v13, %v351_v12  ;;  %v1267_v16 = vld [vmem:[%s2692_s3 + $0x88] sm:$0xff]  ;;  %v1269_v18 = vld [vmem:[%s2692_s3 + $0x98] sm:$0xff]  ;;  %v2111_v12 = vmov 0.0|0.0   ;;  %s2002_s16 = scalar_lea.vmem %s2613_s9, 256 }
  0x5c   : > { %v334_v20 = vld [vmem:[#allocation7] sm:$0xff]  ;;  %v335_v21 = vld [vmem:[#allocation7 + $0x8] sm:$0xff]  ;;  %v1723_v22 = vpack.c.bf16 %v1267_v16, %v1266_v14  ;;  %v1727_v23 = vpack.c.bf16 %v1269_v18, %v1268_v17  ;;  %v1270_v24 = vld [vmem:[%s2692_s3 + $0xa0] sm:$0xff]  ;;  %p2003_p4 = scmp.ne.s32.totalorder %s2613_s9, %s2002_s16  ;;  %s2113_s14 = smov [#allocation9]  }
  0x5d   : > { %v1271_v25 = vld [vmem:[%s2692_s3 + $0xa8] sm:$0xff]  ;;  %v1691_v26 = vpack.c.bf16 %v335_v21, %v334_v20  ;;  %v336_v27 = vld [vmem:[#allocation7 + $0x10] sm:$0xff]  ;;  %v1272_v30 = vld [vmem:[%s2692_s3 + $0xb0] sm:$0xff]  ;;  %s2006_s11 = sshll.u32 %s2113_s14, 4  ;;  %s2007_s11 = int_to_ptr.vmem [resolvable:$false] %s2006_s11 }
  0x5e   : > { %1682 = vmatpush3.bf16.msra.mxu0 %v1679_v6  ;;  %1724 = vmatprep.subr.bf16.mxu1 %v1723_v22  ;;  %v337_v28 = vld [vmem:[#allocation7 + $0x18] sm:$0xff]  ;;  %v1731_v29 = vpack.c.bf16 %v1271_v25, %v1270_v24  ;;  %v1273_v31 = vld [vmem:[%s2692_s3 + $0xb8] sm:$0xff]  ;;  %v338_v35 = vld [vmem:[#allocation7 + $0x20] sm:$0xff]  ;;  %p2004_p6 = pnand %p2003_p4, %p2251_p12  ;;  %s2008_s17 = scalar_lea.vmem %s2007_s11, 512 }
  0x5f   : > { %1684 = vmatprep.subr.bf16.mxu0 %v1683_v11  ;;  %1726 = vmatpush3.bf16.msra.mxu1 %v1723_v22  ;;  %v1695_v33 = vpack.c.bf16 %v337_v28, %v336_v27  ;;  %v339_v36 = vld [vmem:[#allocation7 + $0x28] sm:$0xff]  ;;  %v1735_v37 = vpack.c.bf16 %v1273_v31, %v1272_v30  ;;  %v1274_v38 = vld [vmem:[%s2692_s3 + $0xc0] sm:$0xff]  ;;  %v1275_v39 = vld [vmem:[%s2692_s3 + $0xc8] sm:$0xff]  ;;  %p2009_p10 = scmp.lt.s32.totalorder %s2613_s9, %s2007_s11  ;;  %p2010_p13 = scmp.lt.s32.totalorder %s2008_s17, %s2002_s16 }
  0x60   : > { %1728 = vmatprep.subr.bf16.mxu1 %v1727_v23  ;;  %v1699_v40 = vpack.c.bf16 %v339_v36, %v338_v35  ;;  %v340_v41 = vld [vmem:[#allocation7 + $0x30] sm:$0xff]  ;;  %v341_v42 = vld [vmem:[#allocation7 + $0x38] sm:$0xff]  ;;  %v1739_v43 = vpack.c.bf16 %v1275_v39, %v1274_v38  ;;  %v518_v45 = vld [vmem:[#allocation7 + $0x80] sm:$0xff]  ;;  %p2005_p8 = pneg %p2004_p6 }
  0x61   : > { %v1703_v44 = vpack.c.bf16 %v341_v42, %v340_v41  ;;  %v519_v46 = vld [vmem:[#allocation7 + $0x88] sm:$0xff]  ;;  %v520_v48 = vld [vmem:[#allocation7 + $0x90] sm:$0xff]  ;;  %v521_v49 = vld [vmem:[#allocation7 + $0x98] sm:$0xff]  ;;  %p2011_p3 = por %p2010_p13, %p2009_p10 }
  0x62   : > { %v342_v19 = vld [vmem:[#allocation2 + $0x1] sm:$0xff]  ;;  %1686 = vmatpush3.bf16.msra.mxu0 %v1683_v11  ;;  %v343_v32 = vld [vmem:[#allocation2 + $0x9] sm:$0xff]  ;;  %v1707_v47 = vpack.c.bf16 %v519_v46, %v518_v45  ;;  %v1711_v51 = vpack.c.bf16 %v521_v49, %v520_v48  ;;  %v523_v54 = vld [vmem:[#allocation7 + $0xa8] sm:$0xff] }
  0x63   : > { %1459 = vmatprep.mubr.msk.f32.mxu0 %vm323_vm0, %v342_v19  ;;  %1688 = vmatprep.subr.bf16.mxu0 %v1687_v15  ;;  %v332_v34 = vld [vmem:[#allocation2] sm:$0xff]  ;;  %v333_v50 = vld [vmem:[#allocation2 + $0x8] sm:$0xff]  ;;  %v522_v53 = vld [vmem:[#allocation7 + $0xa0] sm:$0xff]  ;;  %p2012_p7 = pnand %p2011_p3, %p2005_p8 }
  0x64   : > { %1730 = vmatpush3.bf16.msra.mxu1 %v1727_v23  ;;  %v515_v52 = vld [vmem:[#allocation2 + $0x2] sm:$0xff]  ;;  %v1715_v55 = vpack.c.bf16 %v523_v54, %v522_v53  ;;  %v516_v59 = vld [vmem:[#allocation2 + $0xa] sm:$0xff]  ;;  %v1277_v61 = vld [vmem:[%s2692_s3 + $0xd8] sm:$0xff] }
  0x65   : > { %1732 = vmatprep.subr.bf16.mxu1 %v1731_v29  ;;  %v524_v56 = vld [vmem:[#allocation7 + $0xb0] sm:$0xff]  ;;  %v525_v57 = vld [vmem:[#allocation7 + $0xb8] sm:$0xff]  ;;  %v1276_v60 = vld [vmem:[%s2692_s3 + $0xd0] sm:$0xff] }
  0x66   : > { %1690 = vmatpush3.bf16.msra.mxu0 %v1687_v15  ;;  %v1719_v58 = vpack.c.bf16 %v525_v57, %v524_v56  ;;  %v1743_v62 = vpack.c.bf16 %v1277_v61, %v1276_v60  ;;  %v1278_v63 = vld [vmem:[%s2692_s3 + $0xe0] sm:$0xff]  ;;  %v1279_v1 = vld [vmem:[%s2692_s3 + $0xe8] sm:$0xff]  ;;  %v1280_v3 = vld [vmem:[%s2692_s3 + $0xf0] sm:$0xff] }
  0x67   : > { %1692 = vmatprep.subr.bf16.mxu0 %v1691_v26  ;;  %v1747_v2 = vpack.c.bf16 %v1279_v1, %v1278_v63  ;;  %v1281_v4 = vld [vmem:[%s2692_s3 + $0xf8] sm:$0xff]  ;;  %v627_v6 = vld [vmem:[%s2692_s3] sm:$0xff]  ;;  %v628_v7 = vld [vmem:[%s2692_s3 + $0x8] sm:$0xff] }
  0x68   : > { %1734 = vmatpush3.bf16.msra.mxu1 %v1731_v29  ;;  %v1751_v5 = vpack.c.bf16 %v1281_v4, %v1280_v3  ;;  %v1755_v8 = vpack.c.bf16 %v628_v7, %v627_v6  ;;  %v925_v9 = vld [vmem:[%s2694_s5] sm:$0xff]  ;;  %v926_v10 = vld [vmem:[%s2694_s5 + $0x8] sm:$0xff]  ;;  %v927_v11 = vld [vmem:[%s2694_s5 + $0x10] sm:$0xff] }
  0x69   : > { %1460 = vmatmul.mubr.msk.f32.vlgmr.msra.gmra.mrb[0].mxu0 %vm323_vm0, %v343_v32  ;;  %1736 = vmatprep.subr.bf16.mxu1 %v1735_v37  ;;  %v1820_v13 = vpack.c.bf16 %v926_v10, %v925_v9  ;;  %v928_v14 = vld [vmem:[%s2694_s5 + $0x18] sm:$0xff]  ;;  %v929_v16 = vld [vmem:[%s2694_s5 + $0x20] sm:$0xff]  ;;  %v930_v17 = vld [vmem:[%s2694_s5 + $0x28] sm:$0xff] }
  0x6a   : > { %1694 = vmatpush3.bf16.msra.mxu0 %v1691_v26  ;;  %1478 = vmatprep.mubr.msk.f32.mxu0 %vm323_vm0, %v332_v34  ;;  %v1823_v15 = vpack.c.bf16 %v928_v14, %v927_v11  ;;  %v1826_v18 = vpack.c.bf16 %v930_v17, %v929_v16  ;;  %v931_v19 = vld [vmem:[%s2694_s5 + $0x30] sm:$0xff]  ;;  %v932_v20 = vld [vmem:[%s2694_s5 + $0x38] sm:$0xff]  ;;  %v1265_v22 = vld [vmem:[%s2691_s2] ss:$0 sm:$0xff] }
  0x6b   : > { %1696 = vmatprep.subr.bf16.mxu0 %v1695_v33  ;;  %v1829_v21 = vpack.c.bf16 %v932_v20, %v931_v19  ;;  %v629_v27 = vld [vmem:[%s2692_s3 + $0x10] sm:$0xff]  ;;  %v630_v28 = vld [vmem:[%s2692_s3 + $0x18] sm:$0xff]  ;;  %v631_v32 = vld [vmem:[%s2692_s3 + $0x20] sm:$0xff] }
  0x6c   : > { %1738 = vmatpush3.bf16.msra.mxu1 %v1735_v37  ;;  %v1759_v31 = vpack.c.bf16 %v630_v28, %v629_v27  ;;  %v633_v35 = vld [vmem:[%s2692_s3 + $0x30] sm:$0xff]  ;;  %v634_v36 = vld [vmem:[%s2692_s3 + $0x38] sm:$0xff]  ;;  %v635_v39 = vld [vmem:[%s2692_s3 + $0x40] sm:$0xff] }
  0x6d   : > { %1740 = vmatprep.subr.bf16.mxu1 %v1739_v43  ;;  %v1767_v38 = vpack.c.bf16 %v634_v36, %v633_v35  ;;  %v637_v42 = vld [vmem:[%s2692_s3 + $0x50] sm:$0xff]  ;;  %v639_v45 = vld [vmem:[%s2692_s3 + $0x60] sm:$0xff]  ;;  %v640_v46 = vld [vmem:[%s2692_s3 + $0x68] sm:$0xff] }
  0x6e   : > { %1698 = vmatpush3.bf16.msra.mxu0 %v1695_v33  ;;  %v632_v33 = vld [vmem:[%s2692_s3 + $0x28] sm:$0xff]  ;;  %v641_v48 = vld [vmem:[%s2692_s3 + $0x70] sm:$0xff]  ;;  %v642_v49 = vld [vmem:[%s2692_s3 + $0x78] sm:$0xff] }
  0x6f   : > { %1700 = vmatprep.subr.bf16.mxu0 %v1699_v40  ;;  %v1763_v34 = vpack.c.bf16 %v632_v33, %v631_v32  ;;  %v1284_v54 = vld [vmem:[%s2692_s3 + $0x110] sm:$0xff]  ;;  %v1289_v63 = vld [vmem:[%s2692_s3 + $0x138] sm:$0xff]  ;;  %v1291_v3 = vld [vmem:[%s2692_s3 + $0x148] sm:$0xff] }
  0x70   : > { %1742 = vmatpush3.bf16.msra.mxu1 %v1739_v43  ;;  %v638_v43 = vld [vmem:[%s2692_s3 + $0x58] sm:$0xff]  ;;  %v1295_v9 = vld [vmem:[%s2692_s3 + $0x168] sm:$0xff]  ;;  %v1296_v11 = vld [vmem:[%s2692_s3 + $0x170] sm:$0xff] }
  0x71   : > { %1744 = vmatprep.subr.bf16.mxu1 %v1743_v62  ;;  %v1293_v6 = vld [vmem:[%s2692_s3 + $0x158] sm:$0xff]  ;;  %v933_v16 = vld [vmem:[%s2694_s5 + $0x40] sm:$0xff]  ;;  %v934_v17 = vld [vmem:[%s2694_s5 + $0x48] sm:$0xff] }
  0x72   : > { %1702 = vmatpush3.bf16.msra.mxu0 %v1699_v40  ;;  %v636_v40 = vld [vmem:[%s2692_s3 + $0x48] sm:$0xff]  ;;  %v935_v19 = vld [vmem:[%s2694_s5 + $0x50] sm:$0xff]  ;;  %v936_v20 = vld [vmem:[%s2694_s5 + $0x58] sm:$0xff] }
  0x73   : > { %1704 = vmatprep.subr.bf16.mxu0 %v1703_v44  ;;  %v1771_v41 = vpack.c.bf16 %v636_v40, %v635_v39  ;;  %v1298_v28 = vld [vmem:[%s2693_s4] ss:$0 sm:$0xff]  ;;  %v1301_v36 = vld [vmem:[%s2694_s5 + $0x88] sm:$0xff] }
  0x74   : > { %1746 = vmatpush3.bf16.msra.mxu1 %v1743_v62  ;;  %v1288_v62 = vld [vmem:[%s2692_s3 + $0x130] sm:$0xff]  ;;  %v1300_v35 = vld [vmem:[%s2694_s5 + $0x80] sm:$0xff] }
  0x75   : > { %1748 = vmatprep.subr.bf16.mxu1 %v1747_v2  ;;  %v1799_v1 = vpack.c.bf16 %v1289_v63, %v1288_v62  ;;  %v1844_v39 = vpack.c.bf16 %v1301_v36, %v1300_v35 }
  0x76   : > { %1706 = vmatpush3.bf16.msra.mxu0 %v1703_v44  ;;  %v1775_v44 = vpack.c.bf16 %v638_v43, %v637_v42  ;;  %v1303_v42 = vld [vmem:[%s2694_s5 + $0x98] sm:$0xff] }
  0x77   : > { %1708 = vmatprep.subr.bf16.mxu0 %v1707_v47 }
  0x78   : > { %1750 = vmatpush3.bf16.msra.mxu1 %v1747_v2  ;;  %v1290_v2 = vld [vmem:[%s2692_s3 + $0x140] sm:$0xff] }
  0x79   : > { %1479 = vmatmul.mubr.msk.f32.vlgmr.msra.gmra.mrb[0].mxu0 %vm323_vm0, %v333_v50  ;;  %1752 = vmatprep.subr.bf16.mxu1 %v1751_v5  ;;  %v1783_v50 = vpack.c.bf16 %v642_v49, %v641_v48  ;;  %v1803_v4 = vpack.c.bf16 %v1291_v3, %v1290_v2  ;;  %v1308_v49 = vld [vmem:[%s2694_s5 + $0xc0] sm:$0xff] }
  0x7a   : > { %1710 = vmatpush3.bf16.msra.mxu0 %v1707_v47  ;;  %1497 = vmatprep.mubr.msk.f32.mxu0 %vm323_vm0, %v515_v52  ;;  %v1779_v47 = vpack.c.bf16 %v640_v46, %v639_v45  ;;  %v1283_v52 = vld [vmem:[%s2692_s3 + $0x108] sm:$0xff] }
  0x7b   : > { %1712 = vmatprep.subr.bf16.mxu0 %v1711_v51  ;;  %v1305_v45 = vld [vmem:[%s2694_s5 + $0xa8] sm:$0xff] }
  0x7c   : > { %1754 = vmatpush3.bf16.msra.mxu1 %v1751_v5  ;;  %v1292_v5 = vld [vmem:[%s2692_s3 + $0x150] sm:$0xff] }
  0x7d   : > { %1756 = vmatprep.subr.bf16.mxu1 %v1755_v8  ;;  %v1807_v7 = vpack.c.bf16 %v1293_v6, %v1292_v5 }
  0x7e   : > { %1714 = vmatpush3.bf16.msra.mxu0 %v1711_v51  ;;  %v1282_v51 = vld [vmem:[%s2692_s3 + $0x100] sm:$0xff] }
  0x7f   : > { %1716 = vmatprep.subr.bf16.mxu0 %v1715_v55  ;;  %v1787_v53 = vpack.c.bf16 %v1283_v52, %v1282_v51  ;;  %v1310_v52 = vld [vmem:[%s2694_s5 + $0xd0] sm:$0xff] }
  0x82   : > { %1718 = vmatpush3.bf16.msra.mxu0 %v1715_v55  ;;  %v1285_v55 = vld [vmem:[%s2692_s3 + $0x118] sm:$0xff] }
  0x83   : > { %1720 = vmatprep.subr.bf16.mxu0 %v1719_v58  ;;  %v1791_v56 = vpack.c.bf16 %v1285_v55, %v1284_v54  ;;  %v1312_v55 = vld [vmem:[%s2694_s5 + $0xe0] sm:$0xff] }
  0x86   : > { %1722 = vmatpush3.bf16.msra.mxu0 %v1719_v58  ;;  %v1286_v58 = vld [vmem:[%s2692_s3 + $0x120] sm:$0xff] }
  0x87   : > { %1819 = vmatprep.subr.bf16.mxu0 %v2111_v12 }
  0x89   : > { %1498 = vmatmul.mubr.msk.f32.vlgmr.msra.gmra.mrb[0].mxu0 %vm323_vm0, %v516_v59  ;;  %v1287_v59 = vld [vmem:[%s2692_s3 + $0x128] sm:$0xff] }
  0x8a   : > { %1821 = vmatpush3.bf16.msra.mxu0 %v1820_v13  ;;  %v1795_v61 = vpack.c.bf16 %v1287_v59, %v1286_v58  ;;  %v1297_v13 = vld [vmem:[%s2692_s3 + $0x178] sm:$0xff]  ;;  %1637 = vmatprep.mubr.msk.f32.mxu0 %vm2112_vm2, %v2110_v0  ;;  %v1314_v58 = vld [vmem:[%s2694_s5 + $0xf0] sm:$0xff] }
  0x8b   : > { %1822 = vmatprep.subr.bf16.mxu0 %v2111_v12  ;;  %v1815_v14 = vpack.c.bf16 %v1297_v13, %v1296_v11  ;;  %v1315_v59 = vld [vmem:[%s2694_s5 + $0xf8] sm:$0xff] }
  0x8e   : > { %1824 = vmatpush3.bf16.msra.mxu0 %v1823_v15 }
  0x8f   : > { %1825 = vmatprep.subr.bf16.mxu0 %v2111_v12 }
  0x92   : > { %1827 = vmatpush3.bf16.msra.mxu0 %v1826_v18  ;;  %v1832_v18 = vpack.c.bf16 %v934_v17, %v933_v16 }
  0x93   : > { %1828 = vmatprep.subr.bf16.mxu0 %v2111_v12 }
  0x96   : > { %1830 = vmatpush3.bf16.msra.mxu0 %v1829_v21  ;;  %v1835_v21 = vpack.c.bf16 %v936_v20, %v935_v19 }
  0x97   : > { %1831 = vmatprep.subr.bf16.mxu0 %v2111_v12 }
  0x9a   : > { %1833 = vmatpush3.bf16.msra.mxu0 %v1832_v18 }
  0x9b   : > { %1834 = vmatprep.subr.bf16.mxu0 %v2111_v12 }
  0x9e   : > { %1836 = vmatpush3.bf16.msra.mxu0 %v1835_v21 }
  0x9f   : > { %1837 = vmatprep.subr.bf16.mxu0 %v2111_v12 }
 0x15c   : > { %v1499_v23 = vpop.f32.mrb[0].mxu0 }
 0x15d   : > { %v620_v24 = vadd.f32 %v1499_v23, %v1265_v22  ;;  %v598_v25 = vpop.f32.mrb[1].mxu0  ;;  %v938_v23 = vld [vmem:[%s2694_s5 + $0x68] sm:$0xff] }
 0x15e   : > { %v619_v26 = vadd.f32 %v1265_v22, %v598_v25  ;;  %v937_v22 = vld [vmem:[%s2694_s5 + $0x60] sm:$0xff]  ;;  %v939_v25 = vld [vmem:[%s2694_s5 + $0x70] sm:$0xff] }
 0x15f   : > { %v622_v29 = vmax.f32 %v620_v24, 0.0  ;;  %v1838_v24 = vpack.c.bf16 %v938_v23, %v937_v22 }
 0x160   : > { %v621_v30 = vmax.f32 %v619_v26, 0.0  ;;  %v940_v26 = vld [vmem:[%s2694_s5 + $0x78] sm:$0xff] }
 0x161   : > { %624 = vst [vmem:[#allocation3 + $0x9] sm:$0xff] %v622_v29  ;;  %1839 = vmatpush3.bf16.msra.mxu0 %v1838_v24  ;;  %v1841_v27 = vpack.c.bf16 %v940_v26, %v939_v25 }
 0x162   : > { %623 = vst [vmem:[#allocation3 + $0x1] sm:$0xff] %v621_v30  ;;  %1532 = vmatprep.mubr.f32.mxu1 %v621_v30  ;;  %1840 = vmatprep.subr.bf16.mxu0 %v2111_v12 }
 0x163   : > { %1533 = vmatmul.mubr.f32.vlgmr.msra.gmra.mrb[0].mxu1 %v622_v29 }
 0x164   : > { %1758 = vmatpush3.bf16.msra.mxu1 %v1755_v8  ;;  %v1294_v8 = vld [vmem:[%s2692_s3 + $0x160] sm:$0xff] }
 0x165   : > { %1760 = vmatprep.subr.bf16.mxu1 %v1759_v31  ;;  %v1811_v10 = vpack.c.bf16 %v1295_v9, %v1294_v8  ;;  %1842 = vmatpush3.bf16.msra.mxu0 %v1841_v27 }
 0x166   : > { %1843 = vmatprep.subr.bf16.mxu0 %v2111_v12 }
 0x168   : > { %1762 = vmatpush3.bf16.msra.mxu1 %v1759_v31  ;;  %v813_v15 = vld [vmem:[#allocation3 + $0xa] sm:$0xff] }
 0x169   : > { %v625_v37 = vld [vmem:[#allocation3] sm:$0xff]  ;;  %1764 = vmatprep.subr.bf16.mxu1 %v1763_v34  ;;  %v626_v57 = vld [vmem:[#allocation3 + $0x8] sm:$0xff] }
 0x16a   : > { %1567 = vmatprep.mubr.f32.mxu1 %v625_v37  ;;  %v812_v60 = vld [vmem:[#allocation3 + $0x2] sm:$0xff] }
 0x16c   : > { %1766 = vmatpush3.bf16.msra.mxu1 %v1763_v34 }
 0x16d   : > { %1768 = vmatprep.subr.bf16.mxu1 %v1767_v38 }
 0x170   : > { %1770 = vmatpush3.bf16.msra.mxu1 %v1767_v38 }
 0x171   : > { %1772 = vmatprep.subr.bf16.mxu1 %v1771_v41 }
 0x174   : > { %1774 = vmatpush3.bf16.msra.mxu1 %v1771_v41  ;;  %v1302_v41 = vld [vmem:[%s2694_s5 + $0x90] sm:$0xff] }
 0x175   : > { %1776 = vmatprep.subr.bf16.mxu1 %v1775_v44  ;;  %v1847_v43 = vpack.c.bf16 %v1303_v42, %v1302_v41 }
 0x178   : > { %1778 = vmatpush3.bf16.msra.mxu1 %v1775_v44  ;;  %v1304_v44 = vld [vmem:[%s2694_s5 + $0xa0] sm:$0xff] }
 0x179   : > { %1780 = vmatprep.subr.bf16.mxu1 %v1779_v47  ;;  %v1850_v46 = vpack.c.bf16 %v1305_v45, %v1304_v44 }
 0x17c   : > { %1782 = vmatpush3.bf16.msra.mxu1 %v1779_v47  ;;  %v1306_v47 = vld [vmem:[%s2694_s5 + $0xb0] sm:$0xff] }
 0x17d   : > { %1784 = vmatprep.subr.bf16.mxu1 %v1783_v50 }
 0x180   : > { %1786 = vmatpush3.bf16.msra.mxu1 %v1783_v50  ;;  %v1309_v50 = vld [vmem:[%s2694_s5 + $0xc8] sm:$0xff] }
 0x181   : > { %1788 = vmatprep.subr.bf16.mxu1 %v1787_v53  ;;  %v1856_v51 = vpack.c.bf16 %v1309_v50, %v1308_v49 }
 0x183   : > { %1568 = vmatmul.mubr.f32.vlgmr.msra.gmra.mrb[0].mxu1 %v626_v57 }
 0x184   : > { %1790 = vmatpush3.bf16.msra.mxu1 %v1787_v53  ;;  %1602 = vmatprep.mubr.f32.mxu1 %v812_v60  ;;  %v1311_v53 = vld [vmem:[%s2694_s5 + $0xd8] sm:$0xff]  ;;  %v1865_v60 = vpack.c.bf16 %v1315_v59, %v1314_v58 }
 0x185   : > { %1792 = vmatprep.subr.bf16.mxu1 %v1791_v56  ;;  %v1859_v54 = vpack.c.bf16 %v1311_v53, %v1310_v52 }
 0x188   : > { %1794 = vmatpush3.bf16.msra.mxu1 %v1791_v56  ;;  %v1313_v56 = vld [vmem:[%s2694_s5 + $0xe8] sm:$0xff] }
 0x189   : > { %1796 = vmatprep.subr.bf16.mxu1 %v1795_v61  ;;  %v1862_v57 = vpack.c.bf16 %v1313_v56, %v1312_v55 }
 0x18c   : > { %1798 = vmatpush3.bf16.msra.mxu1 %v1795_v61 }
 0x18d   : > { %1800 = vmatprep.subr.bf16.mxu1 %v1799_v1 }
 0x190   : > { %1802 = vmatpush3.bf16.msra.mxu1 %v1799_v1 }
 0x191   : > { %1804 = vmatprep.subr.bf16.mxu1 %v1803_v4 }
 0x194   : > { %1806 = vmatpush3.bf16.msra.mxu1 %v1803_v4 }
 0x195   : > { %1808 = vmatprep.subr.bf16.mxu1 %v1807_v7 }
 0x198   : > { %1810 = vmatpush3.bf16.msra.mxu1 %v1807_v7 }
 0x199   : > { %1812 = vmatprep.subr.bf16.mxu1 %v1811_v10 }
 0x19c   : > { %1814 = vmatpush3.bf16.msra.mxu1 %v1811_v10 }
 0x19d   : > { %1816 = vmatprep.subr.bf16.mxu1 %v1815_v14 }
 0x1a0   : > { %1818 = vmatpush3.bf16.msra.mxu1 %v1815_v14 }
 0x1a3   : > { %1603 = vmatmul.mubr.f32.vlgmr.msra.gmra.mrb[0].mxu1 %v813_v15 }
 0x276   : > { %v1604_v29 = vpop.f32.mrb[0].mxu1 }
 0x277   : > { %v916_v30 = vadd.f32 %v1604_v29, %v1298_v28  ;;  %v897_v31 = vpop.f32.mrb[1].mxu1 }
 0x278   : > { %v915_v32 = vadd.f32 %v1298_v28, %v897_v31 }
 0x279   : > { %v918_v33 = vmax.f32 %v916_v30, 0.0 }
 0x27a   : > { %v917_v34 = vmax.f32 %v915_v32, 0.0 }
 0x27b   : > { %920 = vst [vmem:[%s2543_s30 + $0x8] sm:$0xff] %v918_v33 }
 0x27c   : > { %919 = vst [vmem:[%s2543_s30] sm:$0xff] %v917_v34 }
 0x283   : > { %v921_v37 = vld [vmem:[%s2543_s30] ss:$2 sm:$0xff]  ;;  %v1299_v38 = vld [vmem:[%s2543_s30 + $0x1] ss:$2 sm:$0xff] }
 0x284   : > { %v924_v40 = vmax.f32 %v921_v37, %v1299_v38 }
 0x286   : > { %1638 = vmatmul.mubr.f32.vlgmr.msra.gmra.mrb[2].mxu0 %v924_v40 }
 0x287   : > { %1845 = vmatpush3.bf16.msra.mxu0 %v1844_v39  ;;  %1672 = vmatprep.mubr.msk.f32.mxu0 %vm2112_vm2, %v2110_v0  ;;  %v1307_v0 = vld [vmem:[%s2694_s5 + $0xb8] sm:$0xff] }
 0x288   : > { %1846 = vmatprep.subr.bf16.mxu0 %v2111_v12  ;;  %v1853_v48 = vpack.c.bf16 %v1307_v0, %v1306_v47 }
 0x28b   : > { %1848 = vmatpush3.bf16.msra.mxu0 %v1847_v43 }
 0x28c   : > { %1849 = vmatprep.subr.bf16.mxu0 %v2111_v12 }
 0x28f   : > { %1851 = vmatpush3.bf16.msra.mxu0 %v1850_v46 }
 0x290   : > { %1852 = vmatprep.subr.bf16.mxu0 %v2111_v12 }
 0x293   : > { %1854 = vmatpush3.bf16.msra.mxu0 %v1853_v48 }
 0x294   : > { %1855 = vmatprep.subr.bf16.mxu0 %v2111_v12 }
 0x297   : > { %1857 = vmatpush3.bf16.msra.mxu0 %v1856_v51 }
 0x298   : > { %1858 = vmatprep.subr.bf16.mxu0 %v2111_v12 }
 0x29b   : > { %1860 = vmatpush3.bf16.msra.mxu0 %v1859_v54 }
 0x29c   : > { %1861 = vmatprep.subr.bf16.mxu0 %v2111_v12 }
 0x29f   : > { %1863 = vmatpush3.bf16.msra.mxu0 %v1862_v57 }
 0x2a0   : > { %1864 = vmatprep.subr.bf16.mxu0 %v2111_v12 }
 0x2a3   : > { %1866 = vmatpush3.bf16.msra.mxu0 %v1865_v60 }
 0x2a6   : > { %1673 = vmatmul.mubr.f32.vlgmr.msra.gmra.mrb[4].mxu0 %v924_v40 }
 0x2a7   : > { %2015 = shalt.err (!%p2012_p7)
}
 0x2a8   : > { %s2016_s30 = scalar_lea.hbm %s2610_s15, 256  ;;  %s2020_s23 = scalar_lea.hbm %s2695_s6, 512 }
 0x2a9   : > { %p2017_p9 = scmp.ne.s32.totalorder %s2610_s15, %s2016_s30  ;;  %p2021_p5 = scmp.lt.u32.totalorder %s2610_s15, %s2695_s6 }
 0x2aa   : > { %p2022_p11 = scmp.lt.u32.totalorder %s2020_s23, %s2016_s30  ;;  %p2024_p4 = scmp.lt.u32.totalorder %s2016_s30, %s2610_s15 }
 0x2ab   : > { %p2018_p1 = pnand %p2017_p9, %p2251_p12 }
 0x2ac   : > { %p2023_p2 = por %p2022_p11, %p2021_p5 }
 0x2ad   : > { %p2019_p0 = pneg %p2018_p1 }
 0x2ae   : > { %p2025_p6 = por %p2024_p4, %p2023_p2 }
 0x2b0   : > { %p2026_p8 = pnand %p2025_p6, %p2019_p0 }
 0x2b2   : > { %2029 = shalt.err (!%p2026_p8)
}
 0x2b3   : > { %s2114_s16 = smov 128   ;;  %s2115_s14 = smov 8  }
 0x2b4   : > { %1881 = dma.vmem_to_hbm [thread:$0]  (%p2251_p12), %s2613_s9, 256, %s2610_s15, %s1101_s10, %s2114_s16, %s2114_s16, %s2115_s14  }
 0x2b5   : > { %s1258_s11 = sshll.u32 %s2302_s22, 3  ;;  %s1320_s17 = sshll.u32 %s2178_s28, 7 }
 0x2b6   : > { %s322_s30 = scalar_lea.vmem [#allocation10], %s1258_s11  ;;  %s2644_s29 = scalar_lea.hbm %s2696_s7, %s1320_s17 }
 0x2b7   : > { %s1135_s20 = sshll.u32 %s322_s30, 4  ;;  %s1106_s15 = scalar_lea.sflag [#allocation11], %s2302_s22  ;;  %s2646_s20 = int_to_ptr.vmem [resolvable:$true] %s1135_s20 }
 0x2b8   : > { %s2030_s9 = scalar_lea.vmem %s2646_s20, 128  ;;  %s2116_s28 = smov [#allocation10]  }
 0x2b9   : > { %p2031_p10 = scmp.ne.s32.totalorder %s2646_s20, %s2030_s9  ;;  %s2034_s10 = sshll.u32 %s2116_s28, 4  ;;  %s2035_s10 = int_to_ptr.vmem [resolvable:$false] %s2034_s10 }
 0x2ba   : > { %s2036_s12 = scalar_lea.vmem %s2035_s10, 256  ;;  %p2037_p7 = scmp.lt.s32.totalorder %s2646_s20, %s2035_s10 }
 0x2bb   : > { %p2032_p13 = pnand %p2031_p10, %p2251_p12  ;;  %p2038_p9 = scmp.lt.s32.totalorder %s2036_s12, %s2030_s9 }
 0x2bd   : > { %p2033_p3 = pneg %p2032_p13  ;;  %p2039_p1 = por %p2038_p9, %p2037_p7 }
 0x2bf   : > { %p2040_p0 = pnand %p2039_p1, %p2033_p3 }
 0x359   : > { %v1007_v12 = vpop.f32.mrb[2].mxu0 }
 0x35a   : > { %v1639_v61 = vpop.f32.mrb[3].mxu0 }
 0x379   : > { %v1094_v62 = vpop.f32.mrb[4].mxu0 }
 0x37a   : > { %v1098_v63 = vmax.f32 %v1007_v12, %v1094_v62  ;;  %v1674_v1 = vpop.f32.mrb[5].mxu0 }
 0x37c   : > { %1099 = vst.msk [vmem:[%s322_s30] sm:$0xff] %vm323_vm0, %v1098_v63 }
 0x37d   : > { %2043 = shalt.err (!%p2040_p0)
}
 0x37e   : > { %s2044_s22 = scalar_lea.hbm %s2644_s29, 128  ;;  %s2048_s11 = scalar_lea.hbm %s2696_s7, 256 }
 0x37f   : > { %p2045_p5 = scmp.ne.s32.totalorder %s2644_s29, %s2044_s22  ;;  %p2049_p4 = scmp.lt.u32.totalorder %s2644_s29, %s2696_s7 }
 0x380   : > { %p2050_p6 = scmp.lt.u32.totalorder %s2048_s11, %s2044_s22  ;;  %p2052_p10 = scmp.lt.u32.totalorder %s2044_s22, %s2644_s29 }
 0x381   : > { %p2046_p11 = pnand %p2045_p5, %p2251_p12 }
 0x382   : > { %p2051_p8 = por %p2050_p6, %p2049_p4 }
 0x383   : > { %p2047_p2 = pneg %p2046_p11 }
 0x384   : > { %p2053_p13 = por %p2052_p10, %p2051_p8 }
 0x386   : > { %p2054_p3 = pnand %p2053_p13, %p2047_p2 }
 0x388   : > { %2057 = shalt.err (!%p2054_p3)
}
 0x389   : > { %1882 = dma.vmem_to_hbm [thread:$0]  (%p2251_p12), %s2646_s20, 128, %s2644_s29, %s1106_s15  }
 0x38a PF: > { %s1147_s21 = sand.u32 1, %s2092_s24   ;;  %p2713_p7 = scmp.ne.s32.totalorder %s2702_s8, 0 }
 0x38b   : > { %p2714_p9 = scmp.ge.s32.totalorder %s2104_s27, 2  ;;  %s1148_s23 = scalar_lea.sflag [#allocation6], %s1147_s21 }
 0x38d   : > { %p1894_p1 = pnand %p2714_p9, %p2713_p7 }
 0x38f   : > { %2083 = dma.done.wait (!%p1894_p1), %s1148_s23, 256  }
 0x390   : > { %2085 = vsyncadd (!%p1894_p1), %s1148_s23, 4294967040  ;;  %s1157_s9 = scalar_lea.sflag [#allocation11], %s1147_s21 }
 0x391   : > { %2087 = dma.done.wait (!%p1894_p1), %s1157_s9, 128  }
 0x392   : > { %2089 = vsyncadd (!%p1894_p1), %s1157_s9, 4294967168  ;;  %p25_p12 = scmp.ge.s32.totalorder %s2213_s13, 4   ;;  %s2715_s24 = smov %s2096_s25 }
 0x393   : > { %s2716_s25 = smov %s2100_s26  ;;  %s2717_s26 = smov %s2247_s18 }
 0x394   : > { %s2718_s27 = smov %s2213_s13  ;;  %27 = sbr.rel (!%p25_p12) target bundleno = 8 (0x8), region = 116 }
 0x39b   :  { %1162 = vsyncpa [#allocation5], 1 }
 0x39c   :  { %1164 = vsyncpa [#allocation5 + $0x1], 1 }
 0x39d   :  { %1165 = vsyncpa [#allocation8], 1 }
 0x39e   :  { %1166 = vsyncpa [#allocation6], 1 }
 0x39f   :  { %1168 = vsyncpa [#allocation6 + $0x1], 1 }
 0x3a0   :  { %1169 = vsyncpa [#allocation11], 1 }
 0x3a1   :  { %1171 = vsyncpa [#allocation11 + $0x1], 1 }

</bundles_post_ra>
